<compile_context>
chip_gen: v5e
topology: v5e:2x2
jax: 0.10.0
libtpu: 0.0.40
codegen_flags: <defaults>
</compile_context>

<pallas_src>
import functools

import jax
import jax.numpy as jnp
from jax.experimental import pallas as pl
from jax.experimental.pallas import tpu as pltpu

TEMPERATURE = 0.1                 # info_nce package default
INV_TEMPERATURE = 1.0 / TEMPERATURE
EPS = 1e-12                       # torch.nn.functional.normalize default eps
# Static softmax stabiliser: |cosine| <= 1  =>  every logit <= 1/T.  Using this
# compile-time bound instead of per-row/column maxes removes the max reductions
# and lets both directions share a single exp() pass.  Safe while exp(-2/T) is
# comfortably inside f32 range (i.e. TEMPERATURE is not made drastically smaller).
STATIC_MAX = INV_TEMPERATURE

_VMEM = pl.BlockSpec(memory_space=pltpu.MemorySpace.VMEM)
_SMEM = pl.BlockSpec(memory_space=pltpu.MemorySpace.SMEM)


def _l2_normalize(x):
    # x / max(||x||, EPS)  ==  x * rsqrt(max(||x||^2, EPS^2))   (EUP rsqrt, no divide)
    sq = jnp.sum(x * x, axis=-1, keepdims=True)
    return x * jax.lax.rsqrt(jnp.maximum(sq, EPS * EPS))


# ----------------------------------------------------------------------------
# Step 1 kernel: memory empty -> in-batch negatives, both directions from ONE
# (B,B) matmul; also initializes the (zero-padded) normalized memory banks.
# ----------------------------------------------------------------------------
@functools.lru_cache(maxsize=None)
def _build_self_step(b, d, cap):
    def kernel(v1_ref, v2_ref, loss_ref, bank_g_ref, bank_t_ref):
        v1n = _l2_normalize(v1_ref[...].astype(jnp.float32))
        v2n = _l2_normalize(v2_ref[...].astype(jnp.float32))

        # logits = (v1n / T) @ v2n^T on the MXU (contract last dims, no transpose).
        logits = jax.lax.dot_general(
            v1n * INV_TEMPERATURE, v2n, (((1,), (1,)), ((), ())),
            preferred_element_type=jnp.float32)                      # (B, B)

        if b <= d:
            # diag from the already-computed logits tile (masked lane reduce).
            r = jax.lax.broadcasted_iota(jnp.int32, (b, b), 0)
            c = jax.lax.broadcasted_iota(jnp.int32, (b, b), 1)
            diag = jnp.sum(jnp.where(r == c, logits, 0.0),
                           axis=-1, keepdims=True)                   # (B, 1)
        else:
            diag = jnp.sum(v1n * v2n, axis=-1, keepdims=True) * INV_TEMPERATURE

        # Single exp pass with the static upper bound; row-LSE serves direction 1,
        # column-LSE serves direction 2 (its logits are the transpose).
        p = jnp.exp(logits - STATIC_MAX)                             # (B, B)
        lse_row = STATIC_MAX + jnp.log(jnp.sum(p, axis=-1, keepdims=True))  # (B,1)
        lse_col = STATIC_MAX + jnp.log(jnp.sum(p, axis=0, keepdims=True))   # (1,B)

        diag_mean = jnp.mean(diag, axis=0, keepdims=True)            # (1, 1)
        loss_ref[...] = (jnp.mean(lse_row, axis=0, keepdims=True)
                         + jnp.mean(lse_col, axis=1, keepdims=True)
                         - 2.0 * diag_mean)

        # Bank init: zero-padded buffers of already-normalized rows.
        bank_g_ref[...] = jnp.zeros_like(bank_g_ref)
        bank_t_ref[...] = jnp.zeros_like(bank_t_ref)
        bank_g_ref[0:b, :] = v2n        # memory_graph accumulates v2
        bank_t_ref[0:b, :] = v1n        # memory_text  accumulates v1

    call = pl.pallas_call(
        kernel,
        out_shape=(
            jax.ShapeDtypeStruct((1, 1), jnp.float32),
            jax.ShapeDtypeStruct((cap, d), jnp.float32),
            jax.ShapeDtypeStruct((cap, d), jnp.float32),
        ),
        in_specs=[_VMEM, _VMEM],
        out_specs=(_VMEM, _VMEM, _VMEM),
        compiler_params=pltpu.CompilerParams(vmem_limit_bytes=32 * 1024 * 1024),
        cost_estimate=pl.CostEstimate(
            flops=2 * b * b * d + 8 * b * d,
            transcendentals=b * b + 4 * b,
            bytes_accessed=4 * (2 * b * d + 2 * cap * d + 1)),
    )
    return jax.jit(call)


# ----------------------------------------------------------------------------
# Step >=2 kernel: explicit 'unpaired' negatives from the pre-normalized bank,
# both directions sharing v1n/v2n and the positive dot, PLUS the fused rolling
# bank update (banks aliased input->output via input_output_aliases).
# ----------------------------------------------------------------------------
@functools.lru_cache(maxsize=None)
def _build_neg_step(b, d, cap, memory):
    keep_old = max(0, memory - b)     # old rows that survive a trim (B < memory only)

    def kernel(count_ref, v1_ref, v2_ref, bank_g_ref, bank_t_ref,
               loss_ref, bank_g_out_ref, bank_t_out_ref):
        count = count_ref[0]                                          # SMEM scalar
        v1n = _l2_normalize(v1_ref[...].astype(jnp.float32))
        v2n = _l2_normalize(v2_ref[...].astype(jnp.float32))
        bank_g = bank_g_ref[...]                                      # (CAP, D)
        bank_t = bank_t_ref[...]

        # Positive logit is symmetric: shared between the two directions.
        pos = jnp.sum(v1n * v2n, axis=-1, keepdims=True) * INV_TEMPERATURE   # (B,1)

        neg1 = jax.lax.dot_general(
            v1n * INV_TEMPERATURE, bank_g, (((1,), (1,)), ((), ())),
            preferred_element_type=jnp.float32)                       # (B, CAP)
        neg2 = jax.lax.dot_general(
            v2n * INV_TEMPERATURE, bank_t, (((1,), (1,)), ((), ())),
            preferred_element_type=jnp.float32)                       # (B, CAP)

        # (1, CAP) validity mask, broadcast over both directions.
        valid = jax.lax.broadcasted_iota(jnp.int32, (1, cap), 1) < count

        p_pos = jnp.exp(pos - STATIC_MAX)                             # (B, 1)

        def lse_minus_pos(neg):
            # log-sum-exp over [pos | valid negs] with the static stabiliser.
            p = jnp.where(valid, jnp.exp(neg - STATIC_MAX), 0.0)
            s = p_pos + jnp.sum(p, axis=-1, keepdims=True)
            return STATIC_MAX + jnp.log(s) - pos                      # (B, 1)

        per_row = lse_minus_pos(neg1) + lse_minus_pos(neg2)
        loss_ref[...] = jnp.mean(per_row, axis=0, keepdims=True)      # (1, 1)

        # ----- fused rolling-window bank update (outputs alias the input HBM) ---
        if b >= memory:
            # concat(old, new)[-memory:] keeps only the last `memory` new rows.
            bank_t_out_ref[...] = jnp.zeros_like(bank_t_out_ref)
            bank_g_out_ref[...] = jnp.zeros_like(bank_g_out_ref)
            bank_t_out_ref[0:memory, :] = v1n[b - memory:, :]
            bank_g_out_ref[0:memory, :] = v2n[b - memory:, :]
        else:
            total = count + b
            bank_t_out_ref[...] = bank_t
            bank_g_out_ref[...] = bank_g

            @pl.when(total <= memory)
            def _():                                   # append, no trim
                bank_t_out_ref[pl.ds(count, b), :] = v1n
                bank_g_out_ref[pl.ds(count, b), :] = v2n

            @pl.when(total > memory)
            def _():                                   # keep last old rows + new batch
                old_t = jax.lax.dynamic_slice(bank_t, (count - keep_old, 0), (keep_old, d))
                old_g = jax.lax.dynamic_slice(bank_g, (count - keep_old, 0), (keep_old, d))
                bank_t_out_ref[0:keep_old, :] = old_t
                bank_g_out_ref[0:keep_old, :] = old_g
                bank_t_out_ref[keep_old:memory, :] = v1n
                bank_g_out_ref[keep_old:memory, :] = v2n

    call = pl.pallas_call(
        kernel,
        out_shape=(
            jax.ShapeDtypeStruct((1, 1), jnp.float32),
            jax.ShapeDtypeStruct((cap, d), jnp.float32),
            jax.ShapeDtypeStruct((cap, d), jnp.float32),
        ),
        in_specs=[_SMEM, _VMEM, _VMEM, _VMEM, _VMEM],
        out_specs=(_VMEM, _VMEM, _VMEM),
        input_output_aliases={3: 1, 4: 2},     # bank_graph -> out 1, bank_text -> out 2
        compiler_params=pltpu.CompilerParams(vmem_limit_bytes=32 * 1024 * 1024),
        cost_estimate=pl.CostEstimate(
            flops=4 * b * cap * d + 10 * b * d,
            transcendentals=2 * b * cap + 4 * b,
            bytes_accessed=4 * (2 * b * d + 4 * cap * d + 2)),
    )
    return jax.jit(call, donate_argnums=(3, 4))


# ----------------------------------------------------------------------------
# Module wrapper
# ----------------------------------------------------------------------------
class CustomContrastiveLoss:
    """JAX/Pallas port of customContrastiveLoss.

    `beta` is unused in forward, exactly as in the PyTorch module.  The memory
    bank is a fixed-capacity (CAP, D) zero-padded buffer of L2-normalized rows
    plus a host-tracked valid-row count; the rolling-window update happens
    inside the kernel (banks aliased in/out), so a step is a single fused
    pallas_call with no host-side concat/slice graph."""

    def __init__(self, beta=0.1, memory=5, bank_capacity=128):
        self.beta = beta
        self.memory = memory
        self.capacity = bank_capacity            # lane-dense (multiple of 128)
        self._count = 0
        self._bank_text = None                   # normalized v1 rows, (CAP, D)
        self._bank_graph = None                  # normalized v2 rows, (CAP, D)

    def reset_memory(self):
        self._count = 0
        self._bank_text = None
        self._bank_graph = None

    def __call__(self, v1, v2):
        b, d = v1.shape
        assert max(b, self.memory) <= self.capacity, "bank capacity too small"

        if self._count == 0:
            loss2d, bank_g, bank_t = _build_self_step(b, d, self.capacity)(v1, v2)
            new_count = b                        # first assignment is NOT trimmed
        else:
            count = jnp.array([self._count], dtype=jnp.int32)
            loss2d, bank_g, bank_t = _build_neg_step(b, d, self.capacity, self.memory)(
                count, v1, v2, self._bank_graph, self._bank_text)
            total = self._count + b
            new_count = total if total <= self.memory else self.memory

        if self.memory > 0:
            self._bank_graph = bank_g
            self._bank_text = bank_t
            self._count = new_count
        return loss2d[0, 0]


# ----------------------------------------------------------------------------
# Pure-JAX reference (mirrors the PyTorch semantics) for validation.
# ----------------------------------------------------------------------------
def _ref_normalize(x):
    n = jnp.sqrt(jnp.sum(x * x, axis=-1, keepdims=True))
    return x / jnp.maximum(n, EPS)


def _ref_info_nce(q, p, negs=None):
    qn, pn = _ref_normalize(q), _ref_normalize(p)
    if negs is None:
        logits = qn @ pn.T / TEMPERATURE
        logp = jax.nn.log_softmax(logits, axis=-1)
        idx = jnp.arange(q.shape[0])
        return -jnp.mean(logp[idx, idx])
    nn_ = _ref_normalize(negs)
    pos = jnp.sum(qn * pn, axis=-1, keepdims=True) / TEMPERATURE
    neg = qn @ nn_.T / TEMPERATURE
    logp = jax.nn.log_softmax(jnp.concatenate([pos, neg], axis=1), axis=-1)
    return -jnp.mean(logp[:, 0])


class _RefLoss:
    def __init__(self, memory=5):
        self.memory = memory
        self.memory_text = None
        self.memory_graph = None

    def __call__(self, v1, v2):
        res = _ref_info_nce(v1, v2, self.memory_graph) + _ref_info_nce(v2, v1, self.memory_text)
        if self.memory > 0:
            if self.memory_text is None:
                self.memory_text, self.memory_graph = v1, v2
            else:
                self.memory_text = jnp.concatenate([self.memory_text, v1], 0)
                self.memory_graph = jnp.concatenate([self.memory_graph, v2], 0)
                if self.memory_text.shape[0] > self.memory:
                    self.memory_text = self.memory_text[-self.memory:]
                    self.memory_graph = self.memory_graph[-self.memory:]
        return res


if __name__ == "__main__":
    B, D = 8, 128  # small batch of embeddings, lane-dense feature dim
    key = jax.random.PRNGKey(0)
    k1, k2, k3, k4, k5, k6 = jax.random.split(key, 6)

    loss_fn = CustomContrastiveLoss(beta=0.1, memory=5)
    ref_fn = _RefLoss(memory=5)

    # Step 1: memory empty -> fused in-batch-negatives kernel + bank init.
    v1 = jax.random.normal(k1, (B, D), jnp.float32)
    v2 = jax.random.normal(k2, (B, D), jnp.float32)
    loss1 = loss_fn(v1, v2)
    ref1 = ref_fn(v1, v2)

    # Step 2: memory holds last batch (count=8) -> fused negatives kernel with
    # in-kernel trim of the bank to the last `memory`=5 rows.
    v1b = jax.random.normal(k3, (B, D), jnp.float32)
    v2b = jax.random.normal(k4, (B, D), jnp.float32)
    loss2 = loss_fn(v1b, v2b)
    ref2 = ref_fn(v1b, v2b)

    # Step 3: memory trimmed to 5 rows -> same compiled kernel, count=5.
    v1c = jax.random.normal(k5, (B, D), jnp.float32)
    v2c = jax.random.normal(k6, (B, D), jnp.float32)
    loss3 = loss_fn(v1c, v2c)
    ref3 = ref_fn(v1c, v2c)

    losses = jax.block_until_ready((loss1, loss2, loss3))
    refs = jax.block_until_ready((ref1, ref2, ref3))

    assert all(bool(jnp.isfinite(l)) for l in losses)
    for l, r in zip(losses, refs):
        assert bool(jnp.allclose(l, r, atol=1e-3, rtol=1e-4)), (l, r)
    print("KERNEL_OK")
</pallas_src>

<mosaic_0001>
module attributes {stable_mosaic.version = 11 : i64} {
  func.func @kernel(%arg0: memref<8x128xf32, #tpu.memory_space<vmem>>, %arg1: memref<8x128xf32, #tpu.memory_space<vmem>>, %arg2: memref<1x1xf32, #tpu.memory_space<vmem>>, %arg3: memref<128x128xf32, #tpu.memory_space<vmem>>, %arg4: memref<128x128xf32, #tpu.memory_space<vmem>>) attributes {dimension_semantics = [], scalar_prefetch = 0 : i64, scratch_operands = 0 : i64, tpu.core_type = #tpu.core_type<tc>} {
    %c0 = arith.constant 0 : index
    %c0_0 = arith.constant 0 : index
    %0 = vector.load %arg0[%c0, %c0_0] : memref<8x128xf32, #tpu.memory_space<vmem>>, vector<8x128xf32>
    %1 = arith.mulf %0, %0 : vector<8x128xf32>
    %cst = arith.constant dense<0.000000e+00> : vector<8xf32>
    %2 = vector.multi_reduction <add>, %1, %cst [1] : vector<8x128xf32> to vector<8xf32>
    %3 = vector.shape_cast %2 : vector<8xf32> to vector<8x1xf32>
    %cst_1 = arith.constant 1.000000e-24 : f32
    %4 = vector.broadcast %cst_1 : f32 to vector<8x1xf32>
    %5 = arith.maximumf %3, %4 : vector<8x1xf32>
    %6 = math.rsqrt %5 : vector<8x1xf32>
    %7 = vector.broadcast %6 : vector<8x1xf32> to vector<8x128xf32>
    %8 = arith.mulf %0, %7 : vector<8x128xf32>
    %c0_2 = arith.constant 0 : index
    %c0_3 = arith.constant 0 : index
    %9 = vector.load %arg1[%c0_2, %c0_3] : memref<8x128xf32, #tpu.memory_space<vmem>>, vector<8x128xf32>
    %10 = arith.mulf %9, %9 : vector<8x128xf32>
    %cst_4 = arith.constant dense<0.000000e+00> : vector<8xf32>
    %11 = vector.multi_reduction <add>, %10, %cst_4 [1] : vector<8x128xf32> to vector<8xf32>
    %12 = vector.shape_cast %11 : vector<8xf32> to vector<8x1xf32>
    %cst_5 = arith.constant 1.000000e-24 : f32
    %13 = vector.broadcast %cst_5 : f32 to vector<8x1xf32>
    %14 = arith.maximumf %12, %13 : vector<8x1xf32>
    %15 = math.rsqrt %14 : vector<8x1xf32>
    %16 = vector.broadcast %15 : vector<8x1xf32> to vector<8x128xf32>
    %17 = arith.mulf %9, %16 : vector<8x128xf32>
    %cst_6 = arith.constant 1.000000e+01 : f32
    %18 = vector.broadcast %cst_6 : f32 to vector<8x128xf32>
    %19 = arith.mulf %8, %18 : vector<8x128xf32>
    %cst_7 = arith.constant dense<0.000000e+00> : vector<8x8xf32>
    %20 = tpu.matmul %19, %17, %cst_7 {dimension_numbers = #tpu.dot_dimension_numbers<[1], [1], [0], [0], [0, 0, 1, 0], [], []>} : vector<8x128xf32>, vector<8x128xf32>, vector<8x8xf32> -> vector<8x8xf32>
    %21 = tpu.iota {dimensions = array<i32: 0>} : vector<8x8xi32>
    %22 = tpu.iota {dimensions = array<i32: 1>} : vector<8x8xi32>
    %23 = arith.cmpi eq, %21, %22 : vector<8x8xi32>
    %cst_8 = arith.constant 0.000000e+00 : f32
    %24 = vector.broadcast %cst_8 : f32 to vector<8x8xf32>
    %25 = arith.select %23, %20, %24 : vector<8x8xi1>, vector<8x8xf32>
    %cst_9 = arith.constant dense<0.000000e+00> : vector<8xf32>
    %26 = vector.multi_reduction <add>, %25, %cst_9 [1] : vector<8x8xf32> to vector<8xf32>
    %27 = vector.shape_cast %26 : vector<8xf32> to vector<8x1xf32>
    %cst_10 = arith.constant 1.000000e+01 : f32
    %28 = vector.broadcast %cst_10 : f32 to vector<8x8xf32>
    %29 = arith.subf %20, %28 : vector<8x8xf32>
    %30 = math.exp %29 : vector<8x8xf32>
    %cst_11 = arith.constant dense<0.000000e+00> : vector<8xf32>
    %31 = vector.multi_reduction <add>, %30, %cst_11 [1] : vector<8x8xf32> to vector<8xf32>
    %32 = vector.shape_cast %31 : vector<8xf32> to vector<8x1xf32>
    %33 = math.log %32 : vector<8x1xf32>
    %cst_12 = arith.constant 1.000000e+01 : f32
    %34 = vector.broadcast %cst_12 : f32 to vector<8x1xf32>
    %35 = arith.addf %34, %33 : vector<8x1xf32>
    %cst_13 = arith.constant dense<0.000000e+00> : vector<8xf32>
    %36 = vector.multi_reduction <add>, %30, %cst_13 [0] : vector<8x8xf32> to vector<8xf32>
    %37 = vector.shape_cast %36 : vector<8xf32> to vector<1x8xf32>
    %38 = math.log %37 : vector<1x8xf32>
    %cst_14 = arith.constant 1.000000e+01 : f32
    %39 = vector.broadcast %cst_14 : f32 to vector<1x8xf32>
    %40 = arith.addf %39, %38 : vector<1x8xf32>
    %cst_15 = arith.constant dense<0.000000e+00> : vector<1xf32>
    %41 = vector.multi_reduction <add>, %27, %cst_15 [0] : vector<8x1xf32> to vector<1xf32>
    %42 = vector.shape_cast %41 : vector<1xf32> to vector<1x1xf32>
    %cst_16 = arith.constant 8.000000e+00 : f32
    %43 = vector.broadcast %cst_16 : f32 to vector<1x1xf32>
    %44 = arith.divf %42, %43 : vector<1x1xf32>
    %cst_17 = arith.constant dense<0.000000e+00> : vector<1xf32>
    %45 = vector.multi_reduction <add>, %35, %cst_17 [0] : vector<8x1xf32> to vector<1xf32>
    %46 = vector.shape_cast %45 : vector<1xf32> to vector<1x1xf32>
    %cst_18 = arith.constant 8.000000e+00 : f32
    %47 = vector.broadcast %cst_18 : f32 to vector<1x1xf32>
    %48 = arith.divf %46, %47 : vector<1x1xf32>
    %cst_19 = arith.constant dense<0.000000e+00> : vector<1xf32>
    %49 = vector.multi_reduction <add>, %40, %cst_19 [1] : vector<1x8xf32> to vector<1xf32>
    %50 = vector.shape_cast %49 : vector<1xf32> to vector<1x1xf32>
    %cst_20 = arith.constant 8.000000e+00 : f32
    %51 = vector.broadcast %cst_20 : f32 to vector<1x1xf32>
    %52 = arith.divf %50, %51 : vector<1x1xf32>
    %53 = arith.addf %48, %52 : vector<1x1xf32>
    %cst_21 = arith.constant 2.000000e+00 : f32
    %54 = vector.broadcast %cst_21 : f32 to vector<1x1xf32>
    %55 = arith.mulf %54, %44 : vector<1x1xf32>
    %56 = arith.subf %53, %55 : vector<1x1xf32>
    %c0_22 = arith.constant 0 : index
    %c0_23 = arith.constant 0 : index
    %57 = vector.load %arg2[%c0_22, %c0_23] : memref<1x1xf32, #tpu.memory_space<vmem>>, vector<1x1xf32>
    tpu.vector_store %arg2[%c0_22, %c0_23], %56 {strides = array<i32>} : memref<1x1xf32, #tpu.memory_space<vmem>>, vector<1x1xf32>,
    %cst_24 = arith.constant 0.000000e+00 : f32
    %58 = vector.broadcast %cst_24 : f32 to vector<128x128xf32>
    %c0_25 = arith.constant 0 : index
    %c0_26 = arith.constant 0 : index
    %59 = vector.load %arg3[%c0_25, %c0_26] : memref<128x128xf32, #tpu.memory_space<vmem>>, vector<128x128xf32>
    tpu.vector_store %arg3[%c0_25, %c0_26], %58 {strides = array<i32>} : memref<128x128xf32, #tpu.memory_space<vmem>>, vector<128x128xf32>,
    %cst_27 = arith.constant 0.000000e+00 : f32
    %60 = vector.broadcast %cst_27 : f32 to vector<128x128xf32>
    %c0_28 = arith.constant 0 : index
    %c0_29 = arith.constant 0 : index
    %61 = vector.load %arg4[%c0_28, %c0_29] : memref<128x128xf32, #tpu.memory_space<vmem>>, vector<128x128xf32>
    tpu.vector_store %arg4[%c0_28, %c0_29], %60 {strides = array<i32>} : memref<128x128xf32, #tpu.memory_space<vmem>>, vector<128x128xf32>,
    %c0_30 = arith.constant 0 : index
    %c0_31 = arith.constant 0 : index
    %62 = vector.load %arg3[%c0_30, %c0_31] : memref<128x128xf32, #tpu.memory_space<vmem>>, vector<8x128xf32>
    tpu.vector_store %arg3[%c0_30, %c0_31], %17 {strides = array<i32>} : memref<128x128xf32, #tpu.memory_space<vmem>>, vector<8x128xf32>,
    %c0_32 = arith.constant 0 : index
    %c0_33 = arith.constant 0 : index
    %63 = vector.load %arg4[%c0_32, %c0_33] : memref<128x128xf32, #tpu.memory_space<vmem>>, vector<8x128xf32>
    tpu.vector_store %arg4[%c0_32, %c0_33], %8 {strides = array<i32>} : memref<128x128xf32, #tpu.memory_space<vmem>>, vector<8x128xf32>,
    return
  }
}

</mosaic_0001>

<bundles_post_ra>
// kernel: tpu_custom_call.1
= control target key start
LH: loop header
LB: loop body
LE: loop exit
PB: predicated region body
PF: predicated region fallthrough
CT: control target
= control target key end

     0   :  { %10 = vsyncpa [#allocation3], 0  ;;  %s449_s0 = inlined_call_operand.hbm [shape: f32[8,128], index: 0, kind: input, shape index: {}]   ;;  %s450_s1 = inlined_call_operand.hbm [shape: f32[8,128], index: 1, kind: input, shape index: {}]   ;;  %s451_s2 = inlined_call_operand.hbm [shape: f32[1,1], index: 2, kind: output, shape index: {0}]   ;;  %s452_s3 = inlined_call_operand.hbm [shape: f32[128,128], index: 3, kind: output, shape index: {1}]   ;;  %s453_s4 = inlined_call_operand.hbm [shape: f32[128,128], index: 4, kind: output, shape index: {2}]  }
   0x1   :  { %11 = vsyncpa [#allocation6], 0 }
   0x2   :  { %12 = vsyncpa [#allocation4], 0 }
   0x3   :  { %13 = vsyncpa [#allocation9], 0  ;;  %s19_s17 = sshll.u32 %s449_s0, 4  ;;  %s392_s18 = smov [#allocation2]   ;;  %s20_s17 = int_to_ptr.hbm [resolvable:$true] %s19_s17 }
   0x4   :  { %s21_s19 = sshll.u32 %s392_s18, 4  ;;  %s30_s22 = sshll.u32 %s450_s1, 4  ;;  %s22_s19 = int_to_ptr.vmem [resolvable:$true] %s21_s19  ;;  %s31_s22 = int_to_ptr.hbm [resolvable:$true] %s30_s22 }
   0x5   :  { %24 = dma.hbm_to_vmem [thread:$0]  %s20_s17, 128, %s22_s19, [#allocation3]  }
   0x6   :  { %s393_s23 = smov [#allocation5]  }
   0x7   :  { %s32_s24 = sshll.u32 %s393_s23, 4  ;;  %s33_s24 = int_to_ptr.vmem [resolvable:$true] %s32_s24 }
   0x8   :  { %35 = dma.hbm_to_vmem [thread:$0]  %s31_s22, 128, %s33_s24, [#allocation6]  }
   0x9   :  { %384 = dma.done.wait [#allocation3], 128  }
   0xa   :  { %385 = vsyncadd [#allocation3], 4294967168 }
   0xb   :  { %386 = dma.done.wait [#allocation6], 128  }
   0xc   :  { %387 = vsyncadd [#allocation6], 4294967168  ;;  %v60_v0 = vld [vmem:[#allocation5] sm:$0xff]  ;;  %v432_v2 = vld [vmem:[#allocation2] sm:$0xff]  ;;  %v394_v4 = vmov 0.0   ;;  %v97_v29 = vlaneseq  ;;  %vm103_vm6 = vcmask 64512  }
   0xd   :  { %v61_v1 = vmul.f32 %v60_v0, %v60_v0  ;;  %v45_v3 = vmul.f32 %v432_v2, %v432_v2  ;;  %156 = vst [vmem:[#allocation8 + $0x8] sm:$0xff] %v394_v4  ;;  %s395_s0 = smov [#allocation8]   ;;  %s206_s27 = sshll.u32 %s452_s3, 4  ;;  %v399_v46 = vmov 8.0   ;;  %vm153_vm9 = vcmask 0   ;;  %s207_s27 = int_to_ptr.hbm [resolvable:$true] %s206_s27 }
   0xe   :  { %157 = vst [vmem:[#allocation8 + $0x10] sm:$0xff] %v394_v4  ;;  %v98_v30 = vshrl.u32 %v97_v29, 7  ;;  %v100_v31 = vand.u32 127, %v97_v29  ;;  %s204_s1 = sshll.u32 %s395_s0, 4  ;;  %s396_s28 = smov 128   ;;  %s205_s1 = int_to_ptr.vmem [resolvable:$true] %s204_s1 }
   0xf   :  { %62 = vadd.xlane.f32.xlu0 %v61_v1  ;;  %158 = vst [vmem:[#allocation8 + $0x18] sm:$0xff] %v394_v4  ;;  %s397_s29 = smov 8   ;;  %s398_s30 = smov [#allocation10]  }
  0x10   :  { %159 = vst [vmem:[#allocation8 + $0x20] sm:$0xff] %v394_v4  ;;  %vm101_vm7 = vcmp.eq.s32.totalorder %v98_v30, %v100_v31  ;;  %s217_s5 = sshll.u32 %s398_s30, 4  ;;  %s219_s8 = sshll.u32 %s453_s4, 4  ;;  %s218_s5 = int_to_ptr.vmem [resolvable:$true] %s217_s5  ;;  %s220_s8 = int_to_ptr.hbm [resolvable:$true] %s219_s8 }
  0x11   :  { %160 = vst [vmem:[#allocation8 + $0x28] sm:$0xff] %v394_v4  ;;  %s400_s3 = smov [#allocation7]   ;;  %s196_s11 = sshll.u32 %s451_s2, 4  ;;  %s197_s11 = int_to_ptr.hbm [resolvable:$true] %s196_s11 }
  0x12   :  { %161 = vst [vmem:[#allocation8 + $0x30] sm:$0xff] %v394_v4  ;;  %s194_s4 = sshll.u32 %s400_s3, 4  ;;  %s195_s4 = int_to_ptr.vmem [resolvable:$true] %s194_s4 }
  0x13   :  { %162 = vst [vmem:[#allocation8 + $0x38] sm:$0xff] %v394_v4 }
  0x14   :  { %163 = vst [vmem:[#allocation8 + $0x40] sm:$0xff] %v394_v4 }
  0x15   :  { %164 = vst [vmem:[#allocation8 + $0x48] sm:$0xff] %v394_v4 }
  0x16   :  { %165 = vst [vmem:[#allocation8 + $0x50] sm:$0xff] %v394_v4 }
  0x17   :  { %46 = vadd.xlane.f32.xlu0 %v45_v3  ;;  %166 = vst [vmem:[#allocation8 + $0x58] sm:$0xff] %v394_v4 }
  0x18   :  { %167 = vst [vmem:[#allocation8 + $0x60] sm:$0xff] %v394_v4 }
  0x19   :  { %168 = vst [vmem:[#allocation8 + $0x68] sm:$0xff] %v394_v4 }
  0x1a   :  { %169 = vst [vmem:[#allocation8 + $0x70] sm:$0xff] %v394_v4 }
  0x1b   :  { %170 = vst [vmem:[#allocation8 + $0x78] sm:$0xff] %v394_v4 }
  0x1c   :  { %172 = vst [vmem:[#allocation10 + $0x8] sm:$0xff] %v394_v4 }
  0x1d   :  { %173 = vst [vmem:[#allocation10 + $0x10] sm:$0xff] %v394_v4 }
  0x1e   :  { %174 = vst [vmem:[#allocation10 + $0x18] sm:$0xff] %v394_v4 }
  0x1f   :  { %175 = vst [vmem:[#allocation10 + $0x20] sm:$0xff] %v394_v4 }
  0x20   :  { %176 = vst [vmem:[#allocation10 + $0x28] sm:$0xff] %v394_v4 }
  0x21   :  { %177 = vst [vmem:[#allocation10 + $0x30] sm:$0xff] %v394_v4 }
  0x22   :  { %178 = vst [vmem:[#allocation10 + $0x38] sm:$0xff] %v394_v4 }
  0x23   :  { %179 = vst [vmem:[#allocation10 + $0x40] sm:$0xff] %v394_v4 }
  0x24   :  { %180 = vst [vmem:[#allocation10 + $0x48] sm:$0xff] %v394_v4 }
  0x25   :  { %181 = vst [vmem:[#allocation10 + $0x50] sm:$0xff] %v394_v4 }
  0x26   :  { %182 = vst [vmem:[#allocation10 + $0x58] sm:$0xff] %v394_v4 }
  0x27   :  { %183 = vst [vmem:[#allocation10 + $0x60] sm:$0xff] %v394_v4 }
  0x28   :  { %184 = vst [vmem:[#allocation10 + $0x68] sm:$0xff] %v394_v4 }
  0x29   :  { %185 = vst [vmem:[#allocation10 + $0x70] sm:$0xff] %v394_v4 }
  0x2a   :  { %186 = vst [vmem:[#allocation10 + $0x78] sm:$0xff] %v394_v4 }
  0x82   :  { %v63_v5 = vpop.xlane.xlu0 %62 }
  0x83   :  { %v64_v6 = vmax.f32 %v63_v5, 1e-24 }
  0x85   :  { %252 = vrsqrt.f32 %v64_v6  ;;  %vm71_vm1 = vweird.f32 %v64_v6 }
  0x8a   :  { %v47_v7 = vpop.xlane.xlu0 %46 }
  0x8b   :  { %v253_v8 = vpop.eup %252  ;;  %v48_v9 = vmax.f32 %v47_v7, 1e-24 }
  0x8c   :  { %v66_v10 = vmul.f32 %v253_v8, %v64_v6  ;;  %vm72_vm0 = vweird.f32 %v253_v8 }
  0x8d   :  { %254 = vrsqrt.f32 %v48_v9  ;;  %vm73_vm2 = vmor %vm71_vm1, %vm72_vm0  ;;  %vm55_vm4 = vweird.f32 %v48_v9 }
  0x8e   :  { %v67_v11 = vmul.f32 %v253_v8, %v66_v10 }
  0x90   :  { %v68_v12 = vmul.f32 0.5, %v67_v11 }
  0x92   :  { %v69_v13 = vsub.f32 1.5, %v68_v12 }
  0x93   :  { %v255_v14 = vpop.eup %254 }
  0x94   :  { %v50_v15 = vmul.f32 %v255_v14, %v48_v9  ;;  %v70_v16 = vmul.f32 %v253_v8, %v69_v13  ;;  %vm56_vm3 = vweird.f32 %v255_v14 }
  0x95   :  { %vm57_vm5 = vmor %vm55_vm4, %vm56_vm3 }
  0x96   :  { %v51_v17 = vmul.f32 %v255_v14, %v50_v15  ;;  %v74_v18 = vsel %vm73_vm2, %v253_v8, %v70_v16 }
  0x97   :  { %v75_v19 = vmul.f32 %v74_v18, %v60_v0 }
  0x98   :  { %v52_v20 = vmul.f32 0.5, %v51_v17 }
  0x99   :  { %92 = vmatpush.xpose.msra.mxu0 %v75_v19  ;;  %187 = vst [vmem:[#allocation8] sm:$0xff] %v75_v19 }
  0x9a   :  { %v53_v21 = vsub.f32 1.5, %v52_v20  ;;  %212 = dma.vmem_to_hbm [thread:$0]  %s205_s1, 2048, %s207_s27, [#allocation9], %s396_s28, %s396_s28, %s397_s29  }
  0x9c   :  { %v54_v22 = vmul.f32 %v255_v14, %v53_v21 }
  0x9e   :  { %v58_v23 = vsel %vm57_vm5, %v255_v14, %v54_v22 }
  0x9f   :  { %v59_v24 = vmul.f32 %v58_v23, %v432_v2 }
  0xa1   :  { %v76_v25 = vmul.f32 10.0, %v59_v24  ;;  %188 = vst [vmem:[#allocation10] sm:$0xff] %v59_v24 }
  0xa2   :  { %225 = dma.vmem_to_hbm [thread:$0]  %s218_s5, 2048, %s220_s8, [#allocation9], %s396_s28, %s396_s28, %s397_s29  }
  0xa3   :  { %93 = vmatmul.f32.vlgmr.msra.gmra.mxu0 %v76_v25 }
 0x120   :  { %v94_v26 = vpop.f32.mrf.mxu0 }
 0x121   :  { %v242_v27 = vadd.f32 -10.0, %v94_v26  ;;  %v102_v36 = vsel %vm101_vm7, %v94_v26, 0.0 }
 0x122   :  { %v104_v39 = vsel %vm103_vm6, %v102_v36, 0.0 }
 0x123   :  { %v108_v28 = vmul.f32 1.442695, %v242_v27 }
 0x125   :  { %256 = vpow2.f32 %v108_v28 }
 0x12b   :  { %v257_v32 = vpop.eup %256 }
 0x12c   :  { %v110_v33 = vsel %vm103_vm6, %v257_v32, 0.0 }
 0x12d   :  { %111 = vadd.xlane.f32.xlu1 %v110_v33  ;;  %v116_v34 = vrot.slane %v110_v33, 4 }
 0x12f   :  { %v117_v35 = vadd.f32 %v116_v34, %v110_v33 }
 0x131   :  { %v118_v37 = vrot.slane %v117_v35, 2 }
 0x133   :  { %v119_v38 = vadd.f32 %v118_v37, %v117_v35 }
 0x135   :  { %105 = vadd.xlane.f32.xlu1 %v104_v39  ;;  %v120_v40 = vrot.slane %v119_v38, 1 }
 0x137   :  { %v121_v41 = vadd.f32 %v120_v40, %v119_v38 }
 0x139   :  { %258 = vlog2.f32 %v121_v41 }
 0x13a   :  { %260 = vrcp.f32 %v399_v46 }
 0x13f   :  { %v259_v42 = vpop.eup %258 }
 0x140   :  { %v123_v43 = vmul.f32 0.6931472, %v259_v42  ;;  %v261_v48 = vpop.eup %260 }
 0x141   :  { %v132_v49 = vmul.f32 8.0, %v261_v48  ;;  %vm136_vm8 = vweird.f32 %v261_v48 }
 0x142   :  { %v124_v44 = vadd.f32 10.0, %v123_v43 }
 0x143   :  { %v133_v53 = vsub.f32 1.0, %v132_v49 }
 0x144   :  { %v146_v45 = vsel %vm103_vm6, %v124_v44, 0.0 }
 0x145   :  { %147 = vadd.xlane.f32.xlu2 %v146_v45  ;;  %v134_v58 = vmul.f32 %v261_v48, %v133_v53 }
 0x147   :  { %v135_v63 = vadd.f32 %v261_v48, %v134_v58 }
 0x149   :  { %v137_v3 = vsel %vm136_vm8, %v261_v48, %v135_v63 }
 0x1a0   :  { %v112_v47 = vpop.xlane.xlu1 %111 }
 0x1a1   :  { %262 = vlog2.f32 %v112_v47 }
 0x1a7   :  { %v263_v50 = vpop.eup %262 }
 0x1a8   :  { %v114_v51 = vmul.f32 0.6931472, %v263_v50  ;;  %v106_v52 = vpop.xlane.xlu1 %105 }
 0x1a9   :  { %v125_v54 = vrot.slane %v106_v52, 4 }
 0x1aa   :  { %v115_v55 = vadd.f32 10.0, %v114_v51 }
 0x1ab   :  { %v126_v56 = vadd.f32 %v125_v54, %v106_v52 }
 0x1ac   :  { %v139_v57 = vrot.slane %v115_v55, 4 }
 0x1ad   :  { %v127_v59 = vrot.slane %v126_v56, 2 }
 0x1ae   :  { %v140_v60 = vadd.f32 %v139_v57, %v115_v55 }
 0x1af   :  { %v128_v61 = vadd.f32 %v127_v59, %v126_v56 }
 0x1b0   :  { %v141_v62 = vrot.slane %v140_v60, 2 }
 0x1b1   :  { %v129_v0 = vrot.slane %v128_v61, 1 }
 0x1b2   :  { %v142_v1 = vadd.f32 %v141_v62, %v140_v60 }
 0x1b3   :  { %v130_v2 = vadd.f32 %v129_v0, %v128_v61 }
 0x1b4   :  { %v143_v4 = vrot.slane %v142_v1, 1 }
 0x1b5   :  { %v138_v6 = vmul.f32 %v137_v3, %v130_v2 }
 0x1b6   :  { %v144_v5 = vadd.f32 %v143_v4, %v142_v1 }
 0x1b7   :  { %v151_v11 = vmul.f32 2.0, %v138_v6 }
 0x1b8   :  { %v145_v7 = vmul.f32 %v144_v5, %v137_v3  ;;  %v148_v8 = vpop.xlane.xlu2 %147 }
 0x1b9   :  { %v149_v9 = vmul.f32 %v148_v8, %v137_v3 }
 0x1bb   :  { %v150_v10 = vadd.f32 %v149_v9, %v145_v7 }
 0x1bd   :  { %v152_v12 = vsub.f32 %v150_v10, %v151_v11 }
 0x1bf   :  { %154 = vst.msk [vmem:[#allocation7] sm:$0x1] %vm153_vm9, %v152_v12 }
 0x1c0   :  { %199 = dma.vmem_to_hbm [thread:$0]  %s195_s4, 16, %s197_s11, [#allocation4]  }
 0x1c1   :  { %388 = dma.done.wait [#allocation4], 16  }
 0x1c2   :  { %389 = vsyncadd [#allocation4], 4294967280 }
 0x1c3   :  { %390 = dma.done.wait [#allocation9], 4096  }
 0x1c4   :  { %391 = vsyncadd [#allocation9], 4294963200 }
 0x1c5   :  { %238 = vsyncpa [#allocation3], 1 }
 0x1c6   :  { %239 = vsyncpa [#allocation6], 1 }
 0x1c7   :  { %240 = vsyncpa [#allocation4], 1 }
 0x1c8   :  { %241 = vsyncpa [#allocation9], 1 }

</bundles_post_ra>
